<compile_context>
chip_gen: v5e
topology: v5e:2x2
jax: 0.10.0
libtpu: 0.0.40
codegen_flags: <defaults>
</compile_context>

<pallas_src>
import functools
import math

import jax
import jax.numpy as jnp
from jax.experimental import pallas as pl
from jax.experimental.pallas import tpu as pltpu

D_IN, D_H, D_OUT = 512, 256, 128


def _round_up(x, m):
    return (x + m - 1) // m * m


# ---------------------------------------------------------------------------
# Kernel: ReLU(x@W1+b1) -> @W2'(+BN1,BN2-scale folded)+b2' -> ReLU -> +c2
# ---------------------------------------------------------------------------
def _fc_fixed_kernel(x_ref, w1_ref, b1_ref, w2_ref, b2_ref, c2_ref, o_ref):
    # Layer 1: Linear(512,256) + ReLU.  bf16 MXU, fp32 accumulation.
    x = x_ref[...].astype(jnp.bfloat16)           # no-op when x is already bf16
    h = jnp.dot(x, w1_ref[...], preferred_element_type=jnp.float32)
    h = jnp.maximum(h + b1_ref[...], 0.0)

    # Layer 2: Linear(256,128) with BN1 (s1,c1) and BN2 scale s2 folded into
    # W2/b2, then ReLU and the remaining BN2 shift.
    y = jnp.dot(h.astype(jnp.bfloat16), w2_ref[...],
                preferred_element_type=jnp.float32)
    y = jnp.maximum(y + b2_ref[...], 0.0) + c2_ref[...]

    o_ref[...] = y.astype(o_ref.dtype)


def _choose_tm(batch):
    # Multiple of 16 (bf16 sublane packing), >= ~8 grid steps for megacore /
    # pipelining, capped at 1024 for v7x VMEM headroom.
    return min(1024, _round_up(max(pl.cdiv(batch, 8), 1), 16))


@functools.partial(jax.jit, static_argnames=("out_dtype",))
def fc_fixed_forward(params, x, out_dtype=jnp.float32):
    """x: (B, 512) bf16 (preferred) or fp32 -> (B, 128) out_dtype."""
    B = x.shape[0]
    TM = _choose_tm(B)
    grid = pl.cdiv(B, TM)                        # ragged last block is masked

    flops = 2 * B * (D_IN * D_H + D_H * D_OUT)
    bytes_accessed = (
        B * D_IN * jnp.dtype(x.dtype).itemsize
        + sum(int(v.size) * jnp.dtype(v.dtype).itemsize for v in params.values())
        + B * D_OUT * jnp.dtype(out_dtype).itemsize)

    return pl.pallas_call(
        _fc_fixed_kernel,
        out_shape=jax.ShapeDtypeStruct((B, D_OUT), out_dtype),
        grid_spec=pltpu.PrefetchScalarGridSpec(
            num_scalar_prefetch=0,
            grid=(grid,),
            in_specs=[
                pl.BlockSpec((TM, D_IN), lambda i: (i, 0)),     # x row tile
                pl.BlockSpec((D_IN, D_H), lambda i: (0, 0)),    # W1 (bf16)
                pl.BlockSpec((1, D_H), lambda i: (0, 0)),       # b1
                pl.BlockSpec((D_H, D_OUT), lambda i: (0, 0)),   # W2' (bf16, folded)
                pl.BlockSpec((1, D_OUT), lambda i: (0, 0)),     # b2' (folded)
                pl.BlockSpec((1, D_OUT), lambda i: (0, 0)),     # c2 (BN2 shift)
            ],
            out_specs=pl.BlockSpec((TM, D_OUT), lambda i: (i, 0)),
        ),
        compiler_params=pltpu.CompilerParams(
            dimension_semantics=("parallel",),
            vmem_limit_bytes=32 * 1024 * 1024),
        cost_estimate=pl.CostEstimate(
            flops=flops, transcendentals=0, bytes_accessed=bytes_accessed),
    )(x, params["w1"], params["b1"], params["w2"], params["b2"], params["c2"])


# ---------------------------------------------------------------------------
# Deterministic synthetic parameters (k_init=True semantics) + folding
# ---------------------------------------------------------------------------
def make_fc_fixed_params(key):
    ks = jax.random.split(key, 6)

    def kaiming_uniform(k, fan_in, fan_out):
        # kaiming_uniform_ on the PyTorch (out,in) weight, stored here as W^T.
        bound = math.sqrt(6.0 / fan_in)
        return jax.random.uniform(k, (fan_in, fan_out), jnp.float32, -bound, bound)

    w1 = kaiming_uniform(ks[0], D_IN, D_H)
    w2 = kaiming_uniform(ks[1], D_H, D_OUT)
    b1 = jnp.zeros((D_H,), jnp.float32)          # init.zeros_(bias)
    b2 = jnp.zeros((D_OUT,), jnp.float32)

    def bn_affine(km, kv, n):
        # gamma=1, beta=0 (k_init); synthetic running stats so the folded
        # eval-mode affine is non-trivial.
        gamma = jnp.ones((n,), jnp.float32)
        beta = jnp.zeros((n,), jnp.float32)
        r_mean = 0.1 * jax.random.normal(km, (n,), jnp.float32)
        r_var = jnp.abs(jax.random.normal(kv, (n,), jnp.float32)) + 0.5
        scale = gamma / jnp.sqrt(r_var + 1e-5)
        shift = beta - r_mean * scale
        return scale, shift

    s1, c1 = bn_affine(ks[2], ks[3], D_H)
    s2, c2 = bn_affine(ks[4], ks[5], D_OUT)

    # Fold BN1 and the (strictly positive) BN2 scale into layer 2:
    #   (h*s1 + c1) @ W2 + b2 == h @ (s1[:,None]*W2) + (c1@W2 + b2)
    #   ReLU(z)*s2 + c2       == ReLU(z*s2) + c2        (s2 > 0)
    w2f = (s1[:, None] * w2) * s2[None, :]
    b2f = (c1 @ w2 + b2) * s2

    kernel_params = dict(
        w1=w1.astype(jnp.bfloat16),
        b1=b1.reshape(1, -1),
        w2=w2f.astype(jnp.bfloat16),
        b2=b2f.reshape(1, -1),
        c2=c2.reshape(1, -1),
    )
    ref_params = dict(w1=w1, b1=b1, w2=w2, b2=b2,
                      s1=s1, c1=c1, s2=s2, c2=c2)
    return kernel_params, ref_params


# fp32 eval-mode reference (the original module semantics, unfolded).
def fc_fixed_reference_fp32(rp, x):
    h = x.astype(jnp.float32) @ rp["w1"] + rp["b1"]
    h = jnp.maximum(h, 0.0) * rp["s1"] + rp["c1"]
    y = h @ rp["w2"] + rp["b2"]
    return jnp.maximum(y, 0.0) * rp["s2"] + rp["c2"]


# bf16 reference mirroring the kernel math exactly (tight-tolerance check).
def fc_fixed_reference_bf16(kp, x):
    h = jnp.dot(x.astype(jnp.bfloat16), kp["w1"],
                preferred_element_type=jnp.float32)
    h = jnp.maximum(h + kp["b1"], 0.0)
    y = jnp.dot(h.astype(jnp.bfloat16), kp["w2"],
                preferred_element_type=jnp.float32)
    return jnp.maximum(y + kp["b2"], 0.0) + kp["c2"]


if __name__ == "__main__":
    key = jax.random.PRNGKey(0)
    k_param, k_x = jax.random.split(key)
    kparams, rparams = make_fc_fixed_params(k_param)

    # Upstream producer emits bf16: x is streamed straight into the kernel.
    x = jax.random.normal(k_x, (16, D_IN), jnp.float32).astype(jnp.bfloat16)
    out = jax.block_until_ready(fc_fixed_forward(kparams, x))
    assert out.shape == (16, D_OUT) and out.dtype == jnp.float32

    ref_bf16 = fc_fixed_reference_bf16(kparams, x)
    assert jnp.allclose(out, ref_bf16, atol=2e-2, rtol=2e-2), float(
        jnp.max(jnp.abs(out - ref_bf16)))
    ref_f32 = fc_fixed_reference_fp32(rparams, x)
    assert jnp.allclose(out, ref_f32, atol=1e-1, rtol=1e-1), float(
        jnp.max(jnp.abs(out - ref_f32)))

    # Ragged batch (B % TM != 0): exercises the pad-free cdiv grid with a
    # masked last block (no host-side pad / output slice).
    x2 = jax.random.normal(jax.random.PRNGKey(1), (20, D_IN),
                           jnp.float32).astype(jnp.bfloat16)
    out2 = jax.block_until_ready(fc_fixed_forward(kparams, x2))
    assert out2.shape == (20, D_OUT)
    ref2 = fc_fixed_reference_bf16(kparams, x2)
    assert jnp.allclose(out2, ref2, atol=2e-2, rtol=2e-2), float(
        jnp.max(jnp.abs(out2 - ref2)))

    print("KERNEL_OK")
</pallas_src>

<mosaic_0001>
module attributes {stable_mosaic.version = 11 : i64} {
  func.func @_fc_fixed_kernel(%arg0: i32, %arg1: memref<16x512xbf16, #tpu.memory_space<vmem>>, %arg2: memref<512x256xbf16, #tpu.memory_space<vmem>>, %arg3: memref<1x256xf32, #tpu.memory_space<vmem>>, %arg4: memref<256x128xbf16, #tpu.memory_space<vmem>>, %arg5: memref<1x128xf32, #tpu.memory_space<vmem>>, %arg6: memref<1x128xf32, #tpu.memory_space<vmem>>, %arg7: memref<16x128xf32, #tpu.memory_space<vmem>>) attributes {dimension_semantics = [#tpu.dimension_semantics<parallel>], iteration_bounds = array<i64: 1>, scalar_prefetch = 0 : i64, scratch_operands = 0 : i64, tpu.core_type = #tpu.core_type<tc>, window_params = [{transform_indices = @transform_0, window_bounds = array<i64: 16, 512>}, {pipeline_mode = #tpu.pipeline_mode<synchronous>, transform_indices = @transform_1, window_bounds = array<i64: 512, 256>}, {pipeline_mode = #tpu.pipeline_mode<synchronous>, transform_indices = @transform_2, window_bounds = array<i64: 1, 256>}, {pipeline_mode = #tpu.pipeline_mode<synchronous>, transform_indices = @transform_3, window_bounds = array<i64: 256, 128>}, {pipeline_mode = #tpu.pipeline_mode<synchronous>, transform_indices = @transform_4, window_bounds = array<i64: 1, 128>}, {pipeline_mode = #tpu.pipeline_mode<synchronous>, transform_indices = @transform_5, window_bounds = array<i64: 1, 128>}, {transform_indices = @transform_6, window_bounds = array<i64: 16, 128>}]} {
    %c0 = arith.constant 0 : index
    %c0_0 = arith.constant 0 : index
    %0 = vector.load %arg1[%c0, %c0_0] : memref<16x512xbf16, #tpu.memory_space<vmem>>, vector<16x512xbf16>
    %c0_1 = arith.constant 0 : index
    %c0_2 = arith.constant 0 : index
    %1 = vector.load %arg2[%c0_1, %c0_2] : memref<512x256xbf16, #tpu.memory_space<vmem>>, vector<512x256xbf16>
    %cst = arith.constant dense<0.000000e+00> : vector<16x256xf32>
    %2 = tpu.matmul %0, %1, %cst {dimension_numbers = #tpu.dot_dimension_numbers<[1], [0], [0], [1], [0, 0, 1, 1], [], []>} : vector<16x512xbf16>, vector<512x256xbf16>, vector<16x256xf32> -> vector<16x256xf32>
    %c0_3 = arith.constant 0 : index
    %c0_4 = arith.constant 0 : index
    %3 = vector.load %arg3[%c0_3, %c0_4] : memref<1x256xf32, #tpu.memory_space<vmem>>, vector<1x256xf32>
    %4 = vector.broadcast %3 : vector<1x256xf32> to vector<16x256xf32>
    %5 = arith.addf %2, %4 : vector<16x256xf32>
    %cst_5 = arith.constant 0.000000e+00 : f32
    %6 = vector.broadcast %cst_5 : f32 to vector<16x256xf32>
    %7 = arith.maximumf %5, %6 : vector<16x256xf32>
    %8 = arith.truncf %7 : vector<16x256xf32> to vector<16x256xbf16>
    %c0_6 = arith.constant 0 : index
    %c0_7 = arith.constant 0 : index
    %9 = vector.load %arg4[%c0_6, %c0_7] : memref<256x128xbf16, #tpu.memory_space<vmem>>, vector<256x128xbf16>
    %cst_8 = arith.constant dense<0.000000e+00> : vector<16x128xf32>
    %10 = tpu.matmul %8, %9, %cst_8 {dimension_numbers = #tpu.dot_dimension_numbers<[1], [0], [0], [1], [0, 0, 1, 1], [], []>} : vector<16x256xbf16>, vector<256x128xbf16>, vector<16x128xf32> -> vector<16x128xf32>
    %c0_9 = arith.constant 0 : index
    %c0_10 = arith.constant 0 : index
    %11 = vector.load %arg5[%c0_9, %c0_10] : memref<1x128xf32, #tpu.memory_space<vmem>>, vector<1x128xf32>
    %12 = vector.broadcast %11 : vector<1x128xf32> to vector<16x128xf32>
    %13 = arith.addf %10, %12 : vector<16x128xf32>
    %cst_11 = arith.constant 0.000000e+00 : f32
    %14 = vector.broadcast %cst_11 : f32 to vector<16x128xf32>
    %15 = arith.maximumf %13, %14 : vector<16x128xf32>
    %c0_12 = arith.constant 0 : index
    %c0_13 = arith.constant 0 : index
    %16 = vector.load %arg6[%c0_12, %c0_13] : memref<1x128xf32, #tpu.memory_space<vmem>>, vector<1x128xf32>
    %17 = vector.broadcast %16 : vector<1x128xf32> to vector<16x128xf32>
    %18 = arith.addf %15, %17 : vector<16x128xf32>
    %c0_14 = arith.constant 0 : index
    %c0_15 = arith.constant 0 : index
    %19 = vector.load %arg7[%c0_14, %c0_15] : memref<16x128xf32, #tpu.memory_space<vmem>>, vector<16x128xf32>
    tpu.vector_store %arg7[%c0_14, %c0_15], %18 {strides = array<i32>} : memref<16x128xf32, #tpu.memory_space<vmem>>, vector<16x128xf32>,
    return
  }
  func.func @transform_0(%arg0: i32) -> (i32, i32) {
    %c0_i32 = arith.constant 0 : i32
    %c0_i32_0 = arith.constant 0 : i32
    return %arg0, %c0_i32 : i32, i32
  }
  func.func @transform_1(%arg0: i32) -> (i32, i32) {
    %c0_i32 = arith.constant 0 : i32
    %c0_i32_0 = arith.constant 0 : i32
    %c0_i32_1 = arith.constant 0 : i32
    return %c0_i32, %c0_i32_0 : i32, i32
  }
  func.func @transform_2(%arg0: i32) -> (i32, i32) {
    %c0_i32 = arith.constant 0 : i32
    %c0_i32_0 = arith.constant 0 : i32
    %c0_i32_1 = arith.constant 0 : i32
    return %c0_i32, %c0_i32_0 : i32, i32
  }
  func.func @transform_3(%arg0: i32) -> (i32, i32) {
    %c0_i32 = arith.constant 0 : i32
    %c0_i32_0 = arith.constant 0 : i32
    %c0_i32_1 = arith.constant 0 : i32
    return %c0_i32, %c0_i32_0 : i32, i32
  }
  func.func @transform_4(%arg0: i32) -> (i32, i32) {
    %c0_i32 = arith.constant 0 : i32
    %c0_i32_0 = arith.constant 0 : i32
    %c0_i32_1 = arith.constant 0 : i32
    return %c0_i32, %c0_i32_0 : i32, i32
  }
  func.func @transform_5(%arg0: i32) -> (i32, i32) {
    %c0_i32 = arith.constant 0 : i32
    %c0_i32_0 = arith.constant 0 : i32
    %c0_i32_1 = arith.constant 0 : i32
    return %c0_i32, %c0_i32_0 : i32, i32
  }
  func.func @transform_6(%arg0: i32) -> (i32, i32) {
    %c0_i32 = arith.constant 0 : i32
    %c0_i32_0 = arith.constant 0 : i32
    return %arg0, %c0_i32 : i32, i32
  }
}

</mosaic_0001>

<bundles_post_ra>
// kernel: fc_fixed_forward.1
= control target key start
LH: loop header
LB: loop body
LE: loop exit
PB: predicated region body
PF: predicated region fallthrough
CT: control target
= control target key end

     0   :  { %11 = vsyncpa [#allocation3], 0  ;;  %s1497_s0 = inlined_call_operand.hbm [shape: bf16[16,512], index: 0, kind: input, shape index: {}]   ;;  %s1498_s1 = inlined_call_operand.hbm [shape: bf16[512,256], index: 1, kind: input, shape index: {}]   ;;  %s1499_s2 = inlined_call_operand.hbm [shape: f32[1,256], index: 2, kind: input, shape index: {}]   ;;  %s1500_s3 = inlined_call_operand.hbm [shape: bf16[256,128], index: 3, kind: input, shape index: {}]   ;;  %s1501_s4 = inlined_call_operand.hbm [shape: f32[1,128], index: 4, kind: input, shape index: {}]   ;;  %s1502_s5 = inlined_call_operand.vmem [shape: f32[1,128], index: 5, kind: input, shape index: {}]   ;;  %s1503_s6 = inlined_call_operand.hbm [shape: f32[16,128], index: 6, kind: output, shape index: {}]  }
   0x1   :  { %12 = vsyncpa [#allocation6], 0 }
   0x2   :  { %13 = vsyncpa [#allocation9], 0  ;;  %s32_s23 = sshll.u32 %s1498_s1, 4  ;;  %s33_s23 = int_to_ptr.hbm [resolvable:$true] %s32_s23 }
   0x3   :  { %14 = vsyncpa [#allocation4], 0  ;;  %s1407_s24 = smov [#allocation5]   ;;  %s56_s28 = sshll.u32 %s1500_s3, 4  ;;  %s57_s28 = int_to_ptr.hbm [resolvable:$true] %s56_s28 }
   0x4   :  { %s34_s25 = sshll.u32 %s1407_s24, 4  ;;  %s1408_s29 = smov 128   ;;  %s35_s25 = int_to_ptr.vmem [resolvable:$true] %s34_s25 }
   0x5   :  { %s1409_s30 = smov 8   ;;  %s1410_s7 = smov [#allocation8]  }
   0x6   :  { %40 = dma.hbm_to_vmem [thread:$0]  %s33_s23, 8192, %s35_s25, [#allocation6], %s1408_s29, %s1408_s29, %s1409_s30  }
   0x7   :  { %s58_s8 = sshll.u32 %s1410_s7, 4  ;;  %s1411_s1 = smov 64   ;;  %s59_s8 = int_to_ptr.vmem [resolvable:$true] %s58_s8 }
   0x8   :  { %s1412_s9 = smov 4   ;;  %s19_s12 = sshll.u32 %s1497_s0, 4  ;;  %s20_s12 = int_to_ptr.hbm [resolvable:$true] %s19_s12 }
   0x9   :  { %64 = dma.hbm_to_vmem [thread:$0]  %s57_s28, 2048, %s59_s8, [#allocation9], %s1411_s1, %s1411_s1, %s1412_s9  }
   0xa   :  { %s1413_s13 = smov [#allocation2]   ;;  %s46_s16 = sshll.u32 %s1499_s2, 4  ;;  %s47_s16 = int_to_ptr.hbm [resolvable:$true] %s46_s16 }
   0xb   :  { %s21_s3 = sshll.u32 %s1413_s13, 4  ;;  %s1414_s17 = smov 256   ;;  %s22_s3 = int_to_ptr.vmem [resolvable:$true] %s21_s3 }
   0xc   :  { %s1415_s18 = smov 16   ;;  %s1416_s19 = smov [#allocation7]  }
   0xd   :  { %27 = dma.hbm_to_vmem [thread:$0]  %s20_s12, 512, %s22_s3, [#allocation3], %s1414_s17, %s1414_s17, %s1415_s18  }
   0xe   :  { %s48_s20 = sshll.u32 %s1416_s19, 4  ;;  %s70_s23 = sshll.u32 %s1501_s4, 4  ;;  %s49_s20 = int_to_ptr.vmem [resolvable:$true] %s48_s20  ;;  %s71_s23 = int_to_ptr.hbm [resolvable:$true] %s70_s23 }
   0xf   :  { %51 = dma.hbm_to_vmem [thread:$0]  %s47_s16, 32, %s49_s20, [#allocation6]  }
  0x10   :  { %s1417_s0 = smov [#allocation10]  }
  0x11   :  { %s72_s24 = sshll.u32 %s1417_s0, 4  ;;  %s73_s24 = int_to_ptr.vmem [resolvable:$true] %s72_s24 }
  0x12   :  { %75 = dma.hbm_to_vmem [thread:$0]  %s71_s23, 16, %s73_s24, [#allocation9]  }
  0x13   :  { %1399 = dma.done.wait [#allocation3], 512  }
  0x14   :  { %1400 = vsyncadd [#allocation3], 4294966784 }
  0x15   :  { %1401 = dma.done.wait [#allocation6], 8224  }
  0x16   :  { %1402 = vsyncadd [#allocation6], 4294959072 }
  0x17   :  { %1403 = dma.done.wait [#allocation9], 2064  }
  0x18   :  { %1404 = vsyncadd [#allocation9], 4294965232  ;;  %v895_v0 = vld [vmem:[#allocation5 + $0x70] sm:$0xf]  ;;  %v1176_v1 = vld [vmem:[#allocation5 + $0x74] sm:$0xf0] }
  0x19   :  { %v959_v2 = vld [vmem:[#allocation5 + $0xf0] sm:$0xf]  ;;  %v896_v3 = vor.u32 %v1176_v1, %v895_v0  ;;  %v1192_v4 = vld [vmem:[#allocation5 + $0xf4] sm:$0xf0]  ;;  %v887_v11 = vld [vmem:[#allocation5 + $0x60] sm:$0xf] }
  0x1a   :  { %v1023_v5 = vld [vmem:[#allocation5 + $0x170] sm:$0xf]  ;;  %v1208_v6 = vld [vmem:[#allocation5 + $0x174] sm:$0xf0]  ;;  %v960_v7 = vor.u32 %v1192_v4, %v959_v2  ;;  %v1174_v13 = vld [vmem:[#allocation5 + $0x64] sm:$0xf0] }
  0x1b   :  { %v1024_v8 = vor.u32 %v1208_v6, %v1023_v5  ;;  %v1087_v9 = vld [vmem:[#allocation5 + $0x1f0] sm:$0xf]  ;;  %v1224_v10 = vld [vmem:[#allocation5 + $0x1f4] sm:$0xf0]  ;;  %512 = vmatpush.bf16.msra.mxu0 %v896_v3  ;;  %v951_v14 = vld [vmem:[#allocation5 + $0xe0] sm:$0xf]  ;;  %v888_v16 = vor.u32 %v1174_v13, %v887_v11 }
  0x1c   :  { %v1088_v12 = vor.u32 %v1224_v10, %v1087_v9  ;;  %v1190_v15 = vld [vmem:[#allocation5 + $0xe4] sm:$0xf0]  ;;  %526 = vmatpush.bf16.msra.mxu1 %v960_v7  ;;  %v1015_v18 = vld [vmem:[#allocation5 + $0x160] sm:$0xf]  ;;  %v879_v23 = vld [vmem:[#allocation5 + $0x50] sm:$0xf] }
  0x1d   :  { %540 = vmatpush.bf16.msra.mxu2 %v1024_v8  ;;  %v952_v17 = vor.u32 %v1190_v15, %v951_v14  ;;  %v1206_v19 = vld [vmem:[#allocation5 + $0x164] sm:$0xf0]  ;;  %v1079_v20 = vld [vmem:[#allocation5 + $0x1e0] sm:$0xf]  ;;  %v1172_v24 = vld [vmem:[#allocation5 + $0x54] sm:$0xf0] }
  0x1e   :  { %554 = vmatpush.bf16.msra.mxu3 %v1088_v12  ;;  %v1016_v21 = vor.u32 %v1206_v19, %v1015_v18  ;;  %v1222_v22 = vld [vmem:[#allocation5 + $0x1e4] sm:$0xf0]  ;;  %v943_v26 = vld [vmem:[#allocation5 + $0xd0] sm:$0xf]  ;;  %v1188_v27 = vld [vmem:[#allocation5 + $0xd4] sm:$0xf0]  ;;  %v880_v29 = vor.u32 %v1172_v24, %v879_v23 }
  0x1f   :  { %v1080_v25 = vor.u32 %v1222_v22, %v1079_v20  ;;  %v1007_v28 = vld [vmem:[#allocation5 + $0x150] sm:$0xf]  ;;  %513 = vmatpush.bf16.msra.mxu0 %v888_v16  ;;  %v1204_v30 = vld [vmem:[#allocation5 + $0x154] sm:$0xf0]  ;;  %v944_v33 = vor.u32 %v1188_v27, %v943_v26  ;;  %v871_v35 = vld [vmem:[#allocation5 + $0x40] sm:$0xf] }
  0x20   :  { %v1071_v31 = vld [vmem:[#allocation5 + $0x1d0] sm:$0xf]  ;;  %v1220_v32 = vld [vmem:[#allocation5 + $0x1d4] sm:$0xf0]  ;;  %527 = vmatpush.bf16.msra.mxu1 %v952_v17  ;;  %v1008_v34 = vor.u32 %v1204_v30, %v1007_v28  ;;  %v1170_v36 = vld [vmem:[#allocation5 + $0x44] sm:$0xf0] }
  0x21   :  { %541 = vmatpush.bf16.msra.mxu2 %v1016_v21  ;;  %v935_v37 = vld [vmem:[#allocation5 + $0xc0] sm:$0xf]  ;;  %v1072_v38 = vor.u32 %v1220_v32, %v1071_v31  ;;  %v1186_v39 = vld [vmem:[#allocation5 + $0xc4] sm:$0xf0]  ;;  %v872_v44 = vor.u32 %v1170_v36, %v871_v35  ;;  %v863_v47 = vld [vmem:[#allocation5 + $0x30] sm:$0xf] }
  0x22   :  { %555 = vmatpush.bf16.msra.mxu3 %v1080_v25  ;;  %v999_v40 = vld [vmem:[#allocation5 + $0x140] sm:$0xf]  ;;  %v1202_v41 = vld [vmem:[#allocation5 + $0x144] sm:$0xf0]  ;;  %v936_v45 = vor.u32 %v1186_v39, %v935_v37  ;;  %v1168_v48 = vld [vmem:[#allocation5 + $0x34] sm:$0xf0] }
  0x23   :  { %v1063_v42 = vld [vmem:[#allocation5 + $0x1c0] sm:$0xf]  ;;  %v1218_v43 = vld [vmem:[#allocation5 + $0x1c4] sm:$0xf0]  ;;  %514 = vmatpush.bf16.msra.mxu0 %v880_v29  ;;  %v1000_v46 = vor.u32 %v1202_v41, %v999_v40  ;;  %v927_v49 = vld [vmem:[#allocation5 + $0xb0] sm:$0xf]  ;;  %v864_v56 = vor.u32 %v1168_v48, %v863_v47 }
  0x24   :  { %528 = vmatpush.bf16.msra.mxu1 %v944_v33  ;;  %v1064_v50 = vor.u32 %v1218_v43, %v1063_v42  ;;  %v1184_v51 = vld [vmem:[#allocation5 + $0xb4] sm:$0xf0]  ;;  %v991_v52 = vld [vmem:[#allocation5 + $0x130] sm:$0xf]  ;;  %v855_v59 = vld [vmem:[#allocation5 + $0x20] sm:$0xf] }
  0x25   :  { %542 = vmatpush.bf16.msra.mxu2 %v1008_v34  ;;  %v1200_v53 = vld [vmem:[#allocation5 + $0x134] sm:$0xf0]  ;;  %v1055_v54 = vld [vmem:[#allocation5 + $0x1b0] sm:$0xf]  ;;  %v928_v57 = vor.u32 %v1184_v51, %v927_v49  ;;  %v1166_v60 = vld [vmem:[#allocation5 + $0x24] sm:$0xf0] }
  0x26   :  { %556 = vmatpush.bf16.msra.mxu3 %v1072_v38  ;;  %v1216_v55 = vld [vmem:[#allocation5 + $0x1b4] sm:$0xf0]  ;;  %v992_v58 = vor.u32 %v1200_v53, %v991_v52  ;;  %v919_v61 = vld [vmem:[#allocation5 + $0xa0] sm:$0xf]  ;;  %v1182_v63 = vld [vmem:[#allocation5 + $0xa4] sm:$0xf0]  ;;  %v856_v4 = vor.u32 %v1166_v60, %v855_v59 }
  0x27   :  { %515 = vmatpush.bf16.msra.mxu0 %v872_v44  ;;  %v1056_v62 = vor.u32 %v1216_v55, %v1055_v54  ;;  %v983_v0 = vld [vmem:[#allocation5 + $0x120] sm:$0xf]  ;;  %v1198_v1 = vld [vmem:[#allocation5 + $0x124] sm:$0xf0]  ;;  %v847_v5 = vld [vmem:[#allocation5 + $0x10] sm:$0xf]  ;;  %v920_v6 = vor.u32 %v1182_v63, %v919_v61 }
  0x28   :  { %529 = vmatpush.bf16.msra.mxu1 %v936_v45  ;;  %v1047_v2 = vld [vmem:[#allocation5 + $0x1a0] sm:$0xf]  ;;  %v1214_v3 = vld [vmem:[#allocation5 + $0x1a4] sm:$0xf0]  ;;  %v984_v7 = vor.u32 %v1198_v1, %v983_v0  ;;  %v1164_v8 = vld [vmem:[#allocation5 + $0x14] sm:$0xf0] }
  0x29   :  { %543 = vmatpush.bf16.msra.mxu2 %v1000_v46  ;;  %v911_v9 = vld [vmem:[#allocation5 + $0x90] sm:$0xf]  ;;  %v1180_v10 = vld [vmem:[#allocation5 + $0x94] sm:$0xf0]  ;;  %v1048_v11 = vor.u32 %v1214_v3, %v1047_v2  ;;  %v839_v16 = vld [vmem:[#allocation5] sm:$0xf]  ;;  %v848_v18 = vor.u32 %v1164_v8, %v847_v5 }
  0x2a   :  { %557 = vmatpush.bf16.msra.mxu3 %v1064_v50  ;;  %v975_v12 = vld [vmem:[#allocation5 + $0x110] sm:$0xf]  ;;  %v1196_v13 = vld [vmem:[#allocation5 + $0x114] sm:$0xf0]  ;;  %v1162_v17 = vld [vmem:[#allocation5 + $0x4] sm:$0xf0]  ;;  %v912_v23 = vor.u32 %v1180_v10, %v911_v9 }
  0x2b   :  { %516 = vmatpush.bf16.msra.mxu0 %v864_v56  ;;  %v1039_v14 = vld [vmem:[#allocation5 + $0x190] sm:$0xf]  ;;  %v1212_v15 = vld [vmem:[#allocation5 + $0x194] sm:$0xf0]  ;;  %v903_v19 = vld [vmem:[#allocation5 + $0x80] sm:$0xf]  ;;  %v976_v24 = vor.u32 %v1196_v13, %v975_v12  ;;  %v840_v35 = vor.u32 %v1162_v17, %v839_v16 }
  0x2c   :  { %530 = vmatpush.bf16.msra.mxu1 %v928_v57  ;;  %v1178_v20 = vld [vmem:[#allocation5 + $0x84] sm:$0xf0]  ;;  %v967_v21 = vld [vmem:[#allocation5 + $0x100] sm:$0xf]  ;;  %v1175_v27 = vld [vmem:[#allocation5 + $0x74] sm:$0xf]  ;;  %v1040_v28 = vor.u32 %v1212_v15, %v1039_v14 }
  0x2d   :  { %544 = vmatpush.bf16.msra.mxu2 %v992_v58  ;;  %v1194_v22 = vld [vmem:[#allocation5 + $0x104] sm:$0xf0]  ;;  %v1031_v25 = vld [vmem:[#allocation5 + $0x180] sm:$0xf]  ;;  %v897_v29 = vld [vmem:[#allocation5 + $0x78] sm:$0xf0]  ;;  %v904_v39 = vor.u32 %v1178_v20, %v903_v19 }
  0x2e   :  { %558 = vmatpush.bf16.msra.mxu3 %v1056_v62  ;;  %v1210_v26 = vld [vmem:[#allocation5 + $0x184] sm:$0xf0]  ;;  %v1191_v30 = vld [vmem:[#allocation5 + $0xf4] sm:$0xf]  ;;  %v961_v31 = vld [vmem:[#allocation5 + $0xf8] sm:$0xf0]  ;;  %v968_v40 = vor.u32 %v1194_v22, %v967_v21  ;;  %v900_v45 = vor.u32 %v1175_v27, %v897_v29 }
  0x2f   :  { %517 = vmatpush.bf16.msra.mxu0 %v856_v4  ;;  %v1207_v32 = vld [vmem:[#allocation5 + $0x174] sm:$0xf]  ;;  %v1025_v33 = vld [vmem:[#allocation5 + $0x178] sm:$0xf0]  ;;  %v831_v37 = vld [vmem:[#allocation2 + $0x8] sm:$0xf]  ;;  %v1032_v44 = vor.u32 %v1210_v26, %v1031_v25  ;;  %v964_v49 = vor.u32 %v1191_v30, %v961_v31 }
  0x30   :  { %531 = vmatpush.bf16.msra.mxu1 %v920_v6  ;;  %v1223_v34 = vld [vmem:[#allocation5 + $0x1f4] sm:$0xf]  ;;  %v1089_v36 = vld [vmem:[#allocation5 + $0x1f8] sm:$0xf0]  ;;  %v1160_v38 = vld [vmem:[#allocation2 + $0x14] sm:$0xf0]  ;;  %v1028_v50 = vor.u32 %v1207_v32, %v1025_v33 }
  0x31   :  { %545 = vmatpush.bf16.msra.mxu2 %v984_v7  ;;  %v823_v41 = vld [vmem:[#allocation2] sm:$0xf]  ;;  %v1159_v42 = vld [vmem:[#allocation2 + $0xc] sm:$0xf0]  ;;  %v1158_v43 = vld [vmem:[#allocation2 + $0xc] sm:$0xf]  ;;  %v1092_v54 = vor.u32 %v1223_v34, %v1089_v36  ;;  %v1472_v55 = vor.u32 %v1160_v38, %v831_v37 }
  0x32   :  { %559 = vmatpush.bf16.msra.mxu3 %v1048_v11  ;;  %v833_v46 = vld [vmem:[#allocation2 + $0x18] sm:$0xf0]  ;;  %v1173_v47 = vld [vmem:[#allocation5 + $0x64] sm:$0xf]  ;;  %v889_v48 = vld [vmem:[#allocation5 + $0x68] sm:$0xf0]  ;;  %v1474_v59 = vor.u32 %v1159_v42, %v823_v41 }
  0x33   :  { %518 = vmatpush.bf16.msra.mxu0 %v848_v18  ;;  %v1189_v51 = vld [vmem:[#allocation5 + $0xe4] sm:$0xf]  ;;  %v825_v53 = vld [vmem:[#allocation2 + $0x10] sm:$0xf0]  ;;  %v953_v56 = vld [vmem:[#allocation5 + $0xe8] sm:$0xf0]  ;;  %v1476_v60 = vor.u32 %v1158_v43, %v833_v46  ;;  %v892_v63 = vor.u32 %v1173_v47, %v889_v48 }
  0x34   :  { %532 = vmatpush.bf16.msra.mxu1 %v912_v23  ;;  %v1157_v52 = vld [vmem:[#allocation2 + $0x4] sm:$0xf]  ;;  %v1017_v58 = vld [vmem:[#allocation5 + $0x168] sm:$0xf0]  ;;  %v956_v1 = vor.u32 %v1189_v51, %v953_v56  ;;  %v1171_v3 = vld [vmem:[#allocation5 + $0x54] sm:$0xf] }
  0x35   :  { %546 = vmatpush.bf16.msra.mxu2 %v976_v24  ;;  %v1205_v57 = vld [vmem:[#allocation5 + $0x164] sm:$0xf]  ;;  %v1081_v62 = vld [vmem:[#allocation5 + $0x1e8] sm:$0xf0]  ;;  %v1478_v0 = vor.u32 %v1157_v52, %v825_v53  ;;  %v881_v4 = vld [vmem:[#allocation5 + $0x58] sm:$0xf0] }
  0x36   :  { %560 = vmatpush.bf16.msra.mxu3 %v1040_v28  ;;  %v1221_v61 = vld [vmem:[#allocation5 + $0x1e4] sm:$0xf]  ;;  %v1020_v2 = vor.u32 %v1205_v57, %v1017_v58  ;;  %v1187_v5 = vld [vmem:[#allocation5 + $0xd4] sm:$0xf]  ;;  %v945_v7 = vld [vmem:[#allocation5 + $0xd8] sm:$0xf0]  ;;  %v884_v12 = vor.u32 %v1171_v3, %v881_v4 }
  0x37   :  { %519 = vmatpush.bf16.msra.mxu0 %v840_v35  ;;  %v1084_v6 = vor.u32 %v1221_v61, %v1081_v62  ;;  %v1203_v8 = vld [vmem:[#allocation5 + $0x154] sm:$0xf]  ;;  %v1009_v9 = vld [vmem:[#allocation5 + $0x158] sm:$0xf0]  ;;  %v948_v13 = vor.u32 %v1187_v5, %v945_v7  ;;  %v1169_v15 = vld [vmem:[#allocation5 + $0x44] sm:$0xf] }
  0x38   :  { %533 = vmatpush.bf16.msra.mxu1 %v904_v39  ;;  %v1219_v10 = vld [vmem:[#allocation5 + $0x1d4] sm:$0xf]  ;;  %v1073_v11 = vld [vmem:[#allocation5 + $0x1d8] sm:$0xf0]  ;;  %v1012_v14 = vor.u32 %v1203_v8, %v1009_v9  ;;  %v873_v16 = vld [vmem:[#allocation5 + $0x48] sm:$0xf0] }
  0x39   :  { %547 = vmatpush.bf16.msra.mxu2 %v968_v40  ;;  %v1185_v17 = vld [vmem:[#allocation5 + $0xc4] sm:$0xf]  ;;  %v1076_v18 = vor.u32 %v1219_v10, %v1073_v11  ;;  %v937_v19 = vld [vmem:[#allocation5 + $0xc8] sm:$0xf0]  ;;  %v876_v24 = vor.u32 %v1169_v15, %v873_v16  ;;  %v1167_v27 = vld [vmem:[#allocation5 + $0x34] sm:$0xf] }
  0x3a   :  { %561 = vmatpush.bf16.msra.mxu3 %v1032_v44  ;;  %520 = vmatmul.bf16.vlgmr.msra.gmra.mxu0 %v1474_v59  ;;  %v1201_v20 = vld [vmem:[#allocation5 + $0x144] sm:$0xf]  ;;  %v1001_v21 = vld [vmem:[#allocation5 + $0x148] sm:$0xf0]  ;;  %v940_v25 = vor.u32 %v1185_v17, %v937_v19  ;;  %v865_v28 = vld [vmem:[#allocation5 + $0x38] sm:$0xf0] }
  0x3b   :  { %568 = vmatpush.bf16.msrb.mxu0 %v900_v45  ;;  %534 = vmatmul.bf16.vlgmr.msra.gmra.mxu1 %v1478_v0  ;;  %v1217_v22 = vld [vmem:[#allocation5 + $0x1c4] sm:$0xf]  ;;  %v1065_v23 = vld [vmem:[#allocation5 + $0x1c8] sm:$0xf0]  ;;  %v1004_v26 = vor.u32 %v1201_v20, %v1001_v21  ;;  %v1183_v29 = vld [vmem:[#allocation5 + $0xb4] sm:$0xf]  ;;  %v868_v36 = vor.u32 %v1167_v27, %v865_v28 }
  0x3c   :  { %582 = vmatpush.bf16.msrb.mxu1 %v964_v49  ;;  %548 = vmatmul.bf16.vlgmr.msra.gmra.mxu2 %v1472_v55  ;;  %v1068_v30 = vor.u32 %v1217_v22, %v1065_v23  ;;  %v929_v31 = vld [vmem:[#allocation5 + $0xb8] sm:$0xf0]  ;;  %v1199_v32 = vld [vmem:[#allocation5 + $0x134] sm:$0xf]  ;;  %v1165_v37 = vld [vmem:[#allocation5 + $0x24] sm:$0xf] }
  0x3d   :  { %596 = vmatpush.bf16.msrb.mxu2 %v1028_v50  ;;  %562 = vmatmul.bf16.vlgmr.msra.gmra.mxu3 %v1476_v60  ;;  %v993_v33 = vld [vmem:[#allocation5 + $0x138] sm:$0xf0]  ;;  %v1215_v34 = vld [vmem:[#allocation5 + $0x1b4] sm:$0xf]  ;;  %v857_v38 = vld [vmem:[#allocation5 + $0x28] sm:$0xf0]  ;;  %v932_v39 = vor.u32 %v1183_v29, %v929_v31 }
  0x3e   :  { %610 = vmatpush.bf16.msrb.mxu3 %v1092_v54  ;;  %v1057_v35 = vld [vmem:[#allocation5 + $0x1b8] sm:$0xf0]  ;;  %v996_v40 = vor.u32 %v1199_v32, %v993_v33  ;;  %v1181_v41 = vld [vmem:[#allocation5 + $0xa4] sm:$0xf]  ;;  %v921_v42 = vld [vmem:[#allocation5 + $0xa8] sm:$0xf0]  ;;  %v860_v48 = vor.u32 %v1165_v37, %v857_v38 }
  0x3f   :  { %569 = vmatpush.bf16.msrb.mxu0 %v892_v63  ;;  %v1060_v43 = vor.u32 %v1215_v34, %v1057_v35  ;;  %v1197_v44 = vld [vmem:[#allocation5 + $0x124] sm:$0xf]  ;;  %v985_v45 = vld [vmem:[#allocation5 + $0x128] sm:$0xf0]  ;;  %v924_v49 = vor.u32 %v1181_v41, %v921_v42  ;;  %v1163_v51 = vld [vmem:[#allocation5 + $0x14] sm:$0xf] }
  0x40   :  { %583 = vmatpush.bf16.msrb.mxu1 %v956_v1  ;;  %v1213_v46 = vld [vmem:[#allocation5 + $0x1a4] sm:$0xf]  ;;  %v1049_v47 = vld [vmem:[#allocation5 + $0x1a8] sm:$0xf0]  ;;  %v988_v50 = vor.u32 %v1197_v44, %v985_v45  ;;  %v849_v52 = vld [vmem:[#allocation5 + $0x18] sm:$0xf0] }
  0x41   :  { %597 = vmatpush.bf16.msrb.mxu2 %v1020_v2  ;;  %v1179_v53 = vld [vmem:[#allocation5 + $0x94] sm:$0xf]  ;;  %v1052_v54 = vor.u32 %v1213_v46, %v1049_v47  ;;  %v913_v56 = vld [vmem:[#allocation5 + $0x98] sm:$0xf0]  ;;  %v852_v63 = vor.u32 %v1163_v51, %v849_v52  ;;  %v1161_v3 = vld [vmem:[#allocation5 + $0x4] sm:$0xf] }
  0x42   :  { %611 = vmatpush.bf16.msrb.mxu3 %v1084_v6  ;;  %v1195_v57 = vld [vmem:[#allocation5 + $0x114] sm:$0xf]  ;;  %v977_v58 = vld [vmem:[#allocation5 + $0x118] sm:$0xf0]  ;;  %v916_v1 = vor.u32 %v1179_v53, %v913_v56  ;;  %v841_v4 = vld [vmem:[#allocation5 + $0x8] sm:$0xf0] }
  0x43   :  { %570 = vmatpush.bf16.msrb.mxu0 %v884_v12  ;;  %v1211_v61 = vld [vmem:[#allocation5 + $0x194] sm:$0xf]  ;;  %v1041_v62 = vld [vmem:[#allocation5 + $0x198] sm:$0xf0]  ;;  %v980_v2 = vor.u32 %v1195_v57, %v977_v58  ;;  %v1177_v5 = vld [vmem:[#allocation5 + $0x84] sm:$0xf]  ;;  %v844_v12 = vor.u32 %v1161_v3, %v841_v4 }
  0x44   :  { %584 = vmatpush.bf16.msrb.mxu1 %v948_v13  ;;  %v1044_v6 = vor.u32 %v1211_v61, %v1041_v62  ;;  %v905_v7 = vld [vmem:[#allocation5 + $0x88] sm:$0xf0]  ;;  %v1193_v8 = vld [vmem:[#allocation5 + $0x104] sm:$0xf]  ;;  %v1232_v16 = vld [vmem:[#allocation8 + $0x38] sm:$0xff]  ;;  %s1418_s25 = smov [#allocation11]  }
  0x45   :  { %598 = vmatpush.bf16.msrb.mxu2 %v1012_v14  ;;  %v969_v9 = vld [vmem:[#allocation5 + $0x108] sm:$0xf0]  ;;  %v1209_v10 = vld [vmem:[#allocation5 + $0x184] sm:$0xf]  ;;  %v908_v13 = vor.u32 %v1177_v5, %v905_v7  ;;  %v1231_v17 = vld [vmem:[#allocation8 + $0x30] sm:$0xff]  ;;  %s804_s26 = sshll.u32 %s1418_s25, 4  ;;  %s805_s26 = int_to_ptr.vmem [resolvable:$true] %s804_s26 }
  0x46   :  { %612 = vmatpush.bf16.msrb.mxu3 %v1076_v18  ;;  %v1033_v11 = vld [vmem:[#allocation5 + $0x188] sm:$0xf0]  ;;  %v972_v14 = vor.u32 %v1193_v8, %v969_v9  ;;  %v1229_v19 = vld [vmem:[#allocation8 + $0x20] sm:$0xff]  ;;  %v1228_v20 = vld [vmem:[#allocation8 + $0x18] sm:$0xff]  ;;  %s806_s7 = sshll.u32 %s1503_s6, 4  ;;  %s807_s7 = int_to_ptr.hbm [resolvable:$true] %s806_s7 }
  0x47   :  { %571 = vmatpush.bf16.msrb.mxu0 %v876_v24  ;;  %v1036_v15 = vor.u32 %v1209_v10, %v1033_v11  ;;  %v1230_v18 = vld [vmem:[#allocation8 + $0x28] sm:$0xff]  ;;  %v1227_v21 = vld [vmem:[#allocation8 + $0x10] sm:$0xff]  ;;  %v1225_v23 = vld [vmem:[#allocation8] sm:$0xff] }
  0x48   :  { %585 = vmatpush.bf16.msrb.mxu1 %v940_v25  ;;  %v1226_v22 = vld [vmem:[#allocation8 + $0x8] sm:$0xff]  ;;  %v1240_v24 = vld [vmem:[#allocation8 + $0x78] sm:$0xff]  ;;  %v1237_v25 = vld [vmem:[#allocation8 + $0x60] sm:$0xff] }
  0x49   :  { %599 = vmatpush.bf16.msrb.mxu2 %v1004_v26  ;;  %v1235_v35 = vld [vmem:[#allocation8 + $0x50] sm:$0xff]  ;;  %v1233_v46 = vld [vmem:[#allocation8 + $0x40] sm:$0xff] }
  0x4a   :  { %613 = vmatpush.bf16.msrb.mxu3 %v1068_v30  ;;  %v1236_v30 = vld [vmem:[#allocation8 + $0x58] sm:$0xff]  ;;  %v1253_v10 = vld [vmem:[#allocation10] ss:$0 sm:$0xff] }
  0x4b   :  { %572 = vmatpush.bf16.msrb.mxu0 %v868_v36 }
  0x4c   :  { %586 = vmatpush.bf16.msrb.mxu1 %v932_v39 }
  0x4d   :  { %600 = vmatpush.bf16.msrb.mxu2 %v996_v40  ;;  %v1234_v40 = vld [vmem:[#allocation8 + $0x48] sm:$0xff] }
  0x4e   :  { %614 = vmatpush.bf16.msrb.mxu3 %v1060_v43 }
  0x4f   :  { %573 = vmatpush.bf16.msrb.mxu0 %v860_v48 }
  0x50   :  { %587 = vmatpush.bf16.msrb.mxu1 %v924_v49 }
  0x51   :  { %601 = vmatpush.bf16.msrb.mxu2 %v988_v50 }
  0x52   :  { %615 = vmatpush.bf16.msrb.mxu3 %v1052_v54 }
  0x53   :  { %574 = vmatpush.bf16.msrb.mxu0 %v852_v63 }
  0x54   :  { %588 = vmatpush.bf16.msrb.mxu1 %v916_v1 }
  0x55   :  { %602 = vmatpush.bf16.msrb.mxu2 %v980_v2 }
  0x56   :  { %616 = vmatpush.bf16.msrb.mxu3 %v1044_v6 }
  0x57   :  { %575 = vmatpush.bf16.msrb.mxu0 %v844_v12 }
  0x58   :  { %589 = vmatpush.bf16.msrb.mxu1 %v908_v13 }
  0x59   :  { %603 = vmatpush.bf16.msrb.mxu2 %v972_v14  ;;  %v1254_v14 = vld [vmem:[%s1502_s5] ss:$0 sm:$0xff] }
  0x5a   :  { %617 = vmatpush.bf16.msrb.mxu3 %v1036_v15  ;;  %576 = vmatmul.bf16.vlgmr.msrb.gmra.mxu0 %v1474_v59  ;;  %v1239_v59 = vld [vmem:[#allocation8 + $0x70] sm:$0xff] }
  0x5b   :  { %762 = vmatpush.bf16.msra.mxu0 %v1232_v16  ;;  %590 = vmatmul.bf16.vlgmr.msrb.gmra.mxu1 %v1478_v0  ;;  %v166_v0 = vld [vmem:[#allocation7] sm:$0x3] }
  0x5c   :  { %604 = vmatmul.bf16.vlgmr.msrb.gmra.mxu2 %v1472_v55  ;;  %776 = vmatpush.bf16.msra.mxu1 %v1240_v24  ;;  %v1238_v55 = vld [vmem:[#allocation8 + $0x68] sm:$0xff]  ;;  %v169_v49 = vperm.slane %v166_v0, 1 }
  0x5d   :  { %618 = vmatmul.bf16.vlgmr.msrb.gmra.mxu3 %v1476_v60  ;;  %v168_v60 = vperm.slane %v166_v0, 0 }
  0x5f   :  { %763 = vmatpush.bf16.msra.mxu0 %v1231_v17 }
  0x60   :  { %777 = vmatpush.bf16.msra.mxu1 %v1239_v59 }
  0x63   :  { %764 = vmatpush.bf16.msra.mxu0 %v1230_v18 }
  0x64   :  { %778 = vmatpush.bf16.msra.mxu1 %v1238_v55 }
  0x67   :  { %765 = vmatpush.bf16.msra.mxu0 %v1229_v19 }
  0x68   :  { %779 = vmatpush.bf16.msra.mxu1 %v1237_v25 }
  0x6b   :  { %766 = vmatpush.bf16.msra.mxu0 %v1228_v20 }
  0x6c   :  { %780 = vmatpush.bf16.msra.mxu1 %v1236_v30 }
  0x6f   :  { %767 = vmatpush.bf16.msra.mxu0 %v1227_v21 }
  0x70   :  { %781 = vmatpush.bf16.msra.mxu1 %v1235_v35 }
  0x73   :  { %768 = vmatpush.bf16.msra.mxu0 %v1226_v22 }
  0x74   :  { %782 = vmatpush.bf16.msra.mxu1 %v1234_v40 }
  0x77   :  { %769 = vmatpush.bf16.msra.mxu0 %v1225_v23 }
  0x78   :  { %783 = vmatpush.bf16.msra.mxu1 %v1233_v46 }
  0xb7   :  { %v521_v26 = vpop.f32.mrf.mxu0 }
  0xb8   :  { %v522_v27 = vadd.f32 %v521_v26, %v168_v60  ;;  %v535_v28 = vpop.f32.mrf.mxu1 }
  0xba   :  { %v536_v29 = vadd.f32 %v535_v28, %v522_v27 }
  0xbf   :  { %v549_v31 = vpop.f32.mrf.mxu2  ;;  %v523_v34 = vpop.f32.mrf.mxu0 }
  0xc0   :  { %v563_v32 = vpop.f32.mrf.mxu3  ;;  %v550_v33 = vadd.f32 %v549_v31, %v536_v29  ;;  %v524_v36 = vadd.f32 %v523_v34, %v168_v60  ;;  %v537_v37 = vpop.f32.mrf.mxu1 }
  0xc2   :  { %v538_v38 = vadd.f32 %v537_v37, %v524_v36  ;;  %v564_v39 = vadd.f32 %v563_v32, %v550_v33 }
  0xc4   :  { %v624_v44 = vmax.f32 %v564_v39, 0.0 }
  0xc7   :  { %v551_v41 = vpop.f32.mrf.mxu2 }
  0xc8   :  { %v552_v42 = vadd.f32 %v551_v41, %v538_v38  ;;  %v565_v43 = vpop.f32.mrf.mxu3 }
  0xca   :  { %v566_v45 = vadd.f32 %v565_v43, %v552_v42 }
  0xcc   :  { %v626_v47 = vmax.f32 %v566_v45, 0.0 }
  0xce   :  { %v628_v48 = vpack.c.bf16 %v626_v47, %v624_v44 }
  0xd0   :  { %770 = vmatmul.bf16.vlgmr.msra.gmra.mxu0 %v628_v48 }
  0xd7   :  { %v577_v50 = vpop.f32.mrf.mxu0 }
  0xd8   :  { %v591_v51 = vpop.f32.mrf.mxu1  ;;  %v578_v52 = vadd.f32 %v577_v50, %v169_v49 }
  0xda   :  { %v592_v54 = vadd.f32 %v591_v51, %v578_v52 }
  0xdf   :  { %v605_v53 = vpop.f32.mrf.mxu2  ;;  %v579_v57 = vpop.f32.mrf.mxu0 }
  0xe0   :  { %v619_v56 = vpop.f32.mrf.mxu3  ;;  %v580_v58 = vadd.f32 %v579_v57, %v169_v49  ;;  %v606_v61 = vadd.f32 %v605_v53, %v592_v54  ;;  %v593_v62 = vpop.f32.mrf.mxu1 }
  0xe2   :  { %v594_v63 = vadd.f32 %v593_v62, %v580_v58  ;;  %v620_v2 = vadd.f32 %v619_v56, %v606_v61 }
  0xe4   :  { %v625_v6 = vmax.f32 %v620_v2, 0.0 }
  0xe7   :  { %v607_v1 = vpop.f32.mrf.mxu2 }
  0xe8   :  { %v608_v3 = vadd.f32 %v607_v1, %v594_v63  ;;  %v621_v4 = vpop.f32.mrf.mxu3 }
  0xea   :  { %v622_v5 = vadd.f32 %v621_v4, %v608_v3 }
  0xec   :  { %v627_v7 = vmax.f32 %v622_v5, 0.0 }
  0xee   :  { %v629_v8 = vpack.c.bf16 %v627_v7, %v625_v6 }
  0xf0   :  { %784 = vmatmul.bf16.vlgmr.msra.gmra.mxu1 %v629_v8 }
 0x14d   :  { %v771_v9 = vpop.f32.mrf.mxu0 }
 0x14e   :  { %v772_v11 = vadd.f32 %v1253_v10, %v771_v9 }
 0x155   :  { %v773_v16 = vpop.f32.mrf.mxu0 }
 0x156   :  { %v774_v18 = vadd.f32 %v1253_v10, %v773_v16 }
 0x16d   :  { %v785_v12 = vpop.f32.mrf.mxu1 }
 0x16e   :  { %v786_v13 = vadd.f32 %v785_v12, %v772_v11 }
 0x170   :  { %v790_v15 = vmax.f32 %v786_v13, 0.0 }
 0x172   :  { %v796_v17 = vadd.f32 %v1254_v14, %v790_v15 }
 0x174   :  { %798 = vst [vmem:[#allocation11] sm:$0xff] %v796_v17 }
 0x175   :  { %v787_v19 = vpop.f32.mrf.mxu1 }
 0x176   :  { %v788_v20 = vadd.f32 %v787_v19, %v774_v18 }
 0x178   :  { %v791_v21 = vmax.f32 %v788_v20, 0.0 }
 0x17a   :  { %v797_v22 = vadd.f32 %v1254_v14, %v791_v21 }
 0x17c   :  { %799 = vst [vmem:[#allocation11 + $0x8] sm:$0xff] %v797_v22 }
 0x17d   :  { %812 = dma.vmem_to_hbm [thread:$0]  %s805_s26, 256, %s807_s7, [#allocation4], %s1408_s29, %s1408_s29, %s1409_s30  }
 0x17e   :  { %1405 = dma.done.wait [#allocation4], 256  }
 0x17f   :  { %1406 = vsyncadd [#allocation4], 4294967040 }
 0x180   :  { %817 = vsyncpa [#allocation3], 1 }
 0x181   :  { %818 = vsyncpa [#allocation6], 1 }
 0x182   :  { %819 = vsyncpa [#allocation9], 1 }
 0x183   :  { %820 = vsyncpa [#allocation4], 1 }

</bundles_post_ra>
